<compile_context>
chip_gen: v6e
topology: v6e:2x2x1
jax: 0.10.0
libtpu: 0.0.40
codegen_flags: <defaults>
</compile_context>

<pallas_src>
import jax
import jax.numpy as jnp
from jax.experimental import pallas as pl
from jax.experimental.pallas import tpu as pltpu


def _round_up(v, m):
    return (v + m - 1) // m * m


def _pick_tile(total, want, align):
    """Largest multiple of `align` that divides `total` and is <= want."""
    best = align
    t = align
    lim = min(want, total)
    while t <= lim:
        if total % t == 0:
            best = t
        t += align
    return best


def cheb_k2_kernel(l_ref, xk_ref, x0_ref, w0_ref, w1_ref, b_ref, o_ref, acc_ref):
    """Grid = (row tiles, contraction tiles).

    acc (f32 scratch) accumulates T1 = (L_hat @ x)[row tile] over the k axis.
    On the last k step:  out = ReLU( T0 @ W0 + T1 @ W1 + b ).
    """
    k = pl.program_id(1)

    @pl.when(k == 0)
    def _():
        acc_ref[...] = jnp.zeros_like(acc_ref)

    # Chebyshev order-1 term, accumulated in f32 on the MXU.
    acc_ref[...] += jnp.dot(l_ref[...], xk_ref[...],
                            preferred_element_type=jnp.float32)

    @pl.when(k == pl.num_programs(1) - 1)
    def _():
        t0 = x0_ref[...]                      # [tile_n, Fin_p]  (order 0)
        t1 = acc_ref[...].astype(t0.dtype)    # [tile_n, Fin_p]  (order 1)
        out = jnp.dot(t0, w0_ref[...], preferred_element_type=jnp.float32)
        out = out + jnp.dot(t1, w1_ref[...], preferred_element_type=jnp.float32)
        out = out + b_ref[...]                # broadcast [1, Fout_p]
        o_ref[...] = jnp.maximum(out, 0.0).astype(o_ref.dtype)   # ReLU


def cheb_layer_forward(x, edge_index, edge_weight, w0, w1, bias, *,
                       tile_n=256, tile_k=512, compute_dtype=jnp.bfloat16):
    """ChebLayer forward: ChebConv(K=2, sym, lambda_max=2) + ReLU."""
    n, fin = x.shape
    fout = w0.shape[1]
    out_dtype = x.dtype

    # ---- graph glue (plain JAX): dense scaled Laplacian -------------------
    src = edge_index[0]
    dst = edge_index[1]
    if edge_weight is None:
        ew = jnp.ones((src.shape[0],), jnp.float32)
    else:
        ew = edge_weight.astype(jnp.float32)
    ew = jnp.where(src != dst, ew, 0.0)                 # remove_self_loops

    # propagate(): out[dst] += w * x[src]   ->  adj[dst, src]
    adj = jnp.zeros((n, n), jnp.float32).at[dst, src].add(ew)
    # PyG get_laplacian(sym): deg accumulated over edge_index[0]
    deg = jnp.zeros((n,), jnp.float32).at[src].add(ew)
    dis = jnp.where(deg > 0, jax.lax.rsqrt(jnp.maximum(deg, 1e-30)), 0.0)
    # L = I - D^-1/2 A D^-1/2 ; L_hat = 2L/lambda_max - I = -D^-1/2 A D^-1/2
    l_hat = -(dis[:, None] * adj * dis[None, :])

    # ---- padding / tiling --------------------------------------------------
    n_p = _round_up(n, 128)                 # lane + sublane aligned node count
    fin_p = _round_up(fin, 128)             # lane-dense feature dims
    fout_p = _round_up(fout, 128)
    tile_n = _pick_tile(n_p, tile_n, 8)
    tile_k = _pick_tile(n_p, tile_k, 128)

    l_p = jnp.zeros((n_p, n_p), compute_dtype).at[:n, :n].set(
        l_hat.astype(compute_dtype))
    x_p = jnp.zeros((n_p, fin_p), compute_dtype).at[:n, :fin].set(
        x.astype(compute_dtype))
    w0_p = jnp.zeros((fin_p, fout_p), compute_dtype).at[:fin, :fout].set(
        w0.astype(compute_dtype))
    w1_p = jnp.zeros((fin_p, fout_p), compute_dtype).at[:fin, :fout].set(
        w1.astype(compute_dtype))
    b_p = jnp.zeros((1, fout_p), jnp.float32).at[0, :fout].set(
        bias.astype(jnp.float32))

    grid = (n_p // tile_n, n_p // tile_k)

    # ---- VMEM budget (double-buffered inputs + output + f32 accumulator) --
    cb = jnp.dtype(compute_dtype).itemsize
    ob = jnp.dtype(out_dtype).itemsize
    vmem_bytes = (
        2 * tile_n * tile_k * cb            # L_hat strip
        + 2 * tile_k * fin_p * cb           # x contraction tile
        + 2 * tile_n * fin_p * cb           # x row tile (T0)
        + 2 * 2 * fin_p * fout_p * cb       # W0, W1
        + 2 * fout_p * 4                    # bias
        + 2 * tile_n * fout_p * ob          # output tile
        + tile_n * fin_p * 4                # f32 accumulator scratch
    )
    # >= 32 MiB so we never shrink the default scoped limit; <= 64 MiB so the
    # setting is also valid on v7x (64 MiB VMEM per TensorCore).
    vmem_limit = int(min(64 << 20, max(32 << 20, 2 * vmem_bytes + (4 << 20))))

    out_p = pl.pallas_call(
        cheb_k2_kernel,
        out_shape=jax.ShapeDtypeStruct((n_p, fout_p), out_dtype),
        grid_spec=pltpu.PrefetchScalarGridSpec(
            num_scalar_prefetch=0,
            grid=grid,
            in_specs=[
                pl.BlockSpec((tile_n, tile_k), lambda i, k: (i, k)),   # L_hat
                pl.BlockSpec((tile_k, fin_p), lambda i, k: (k, 0)),    # x (k tile)
                pl.BlockSpec((tile_n, fin_p), lambda i, k: (i, 0)),    # x (row tile)
                pl.BlockSpec((fin_p, fout_p), lambda i, k: (0, 0)),    # W0
                pl.BlockSpec((fin_p, fout_p), lambda i, k: (0, 0)),    # W1
                pl.BlockSpec((1, fout_p), lambda i, k: (0, 0)),        # bias
            ],
            out_specs=pl.BlockSpec((tile_n, fout_p), lambda i, k: (i, 0)),
            scratch_shapes=[pltpu.VMEM((tile_n, fin_p), jnp.float32)],
        ),
        compiler_params=pltpu.CompilerParams(
            dimension_semantics=("parallel", "arbitrary"),
            vmem_limit_bytes=vmem_limit,
        ),
    )(l_p, x_p, x_p, w0_p, w1_p, b_p)

    return out_p[:n, :fout]


def reference_forward(x, edge_index, edge_weight, w0, w1, bias):
    """Pure-JAX f32 reference of the same math (sanity check)."""
    n = x.shape[0]
    src, dst = edge_index[0], edge_index[1]
    ew = jnp.where(src != dst, edge_weight.astype(jnp.float32), 0.0)
    adj = jnp.zeros((n, n), jnp.float32).at[dst, src].add(ew)
    deg = jnp.zeros((n,), jnp.float32).at[src].add(ew)
    dis = jnp.where(deg > 0, deg ** -0.5, 0.0)
    l_hat = -(dis[:, None] * adj * dis[None, :])
    out = x @ w0 + (l_hat @ x) @ w1 + bias[None, :]
    return jnp.maximum(out, 0.0)


if __name__ == "__main__":
    key = jax.random.PRNGKey(0)
    k_x, k_e, k_w, k_w0, k_w1 = jax.random.split(key, 5)

    # Small synthetic graph.  N is deliberately NOT a multiple of the tiles to
    # exercise the padding path; the demo tile sizes give a (4, 2) grid so both
    # the parallel row axis and the k-accumulation axis are exercised.
    N, E = 200, 600
    IN_FEAT, OUT_FEAT = 16, 32

    x = jax.random.normal(k_x, (N, IN_FEAT), jnp.float32)
    edge_index = jax.random.randint(k_e, (2, E), 0, N, dtype=jnp.int32)
    edge_weight = jax.random.uniform(k_w, (E,), jnp.float32, 0.1, 1.0)

    # ChebConv parameters: K=2 linear layers (glorot uniform), zero bias.
    limit = (6.0 / (IN_FEAT + OUT_FEAT)) ** 0.5
    w0 = jax.random.uniform(k_w0, (IN_FEAT, OUT_FEAT), jnp.float32, -limit, limit)
    w1 = jax.random.uniform(k_w1, (IN_FEAT, OUT_FEAT), jnp.float32, -limit, limit)
    bias = jnp.zeros((OUT_FEAT,), jnp.float32)

    out = cheb_layer_forward(x, edge_index, edge_weight, w0, w1, bias,
                             tile_n=64, tile_k=128,
                             compute_dtype=jnp.bfloat16)
    out = jax.block_until_ready(out)

    ref = reference_forward(x, edge_index, edge_weight, w0, w1, bias)
    assert out.shape == (N, OUT_FEAT)
    # bf16 compute path vs f32 reference -> loose-but-meaningful tolerance.
    assert jnp.allclose(out, ref, atol=5e-2, rtol=5e-2)

    print("KERNEL_OK")
</pallas_src>

<mosaic_0001>
module attributes {stable_mosaic.version = 11 : i64} {
  func.func @cheb_k2_kernel(%arg0: i32, %arg1: i32, %arg2: memref<64x128xbf16, #tpu.memory_space<vmem>>, %arg3: memref<128x128xbf16, #tpu.memory_space<vmem>>, %arg4: memref<64x128xbf16, #tpu.memory_space<vmem>>, %arg5: memref<128x128xbf16, #tpu.memory_space<vmem>>, %arg6: memref<128x128xbf16, #tpu.memory_space<vmem>>, %arg7: memref<1x128xf32, #tpu.memory_space<vmem>>, %arg8: memref<64x128xf32, #tpu.memory_space<vmem>>, %arg9: memref<64x128xf32, #tpu.memory_space<vmem>>) attributes {dimension_semantics = [#tpu.dimension_semantics<parallel>, #tpu.dimension_semantics<arbitrary>], iteration_bounds = array<i64: 4, 2>, scalar_prefetch = 0 : i64, scratch_operands = 1 : i64, tpu.core_type = #tpu.core_type<tc>, window_params = [{transform_indices = @transform_0, window_bounds = array<i64: 64, 128>}, {transform_indices = @transform_1, window_bounds = array<i64: 128, 128>}, {transform_indices = @transform_2, window_bounds = array<i64: 64, 128>}, {pipeline_mode = #tpu.pipeline_mode<synchronous>, transform_indices = @transform_3, window_bounds = array<i64: 128, 128>}, {pipeline_mode = #tpu.pipeline_mode<synchronous>, transform_indices = @transform_4, window_bounds = array<i64: 128, 128>}, {pipeline_mode = #tpu.pipeline_mode<synchronous>, transform_indices = @transform_5, window_bounds = array<i64: 1, 128>}, {transform_indices = @transform_6, window_bounds = array<i64: 64, 128>}]} {
    %c0_i32 = arith.constant 0 : i32
    %0 = arith.cmpi eq, %arg1, %c0_i32 : i32
    %1 = arith.extui %0 : i1 to i32
    %c0_i32_0 = arith.constant 0 : i32
    %2 = arith.cmpi ne, %1, %c0_i32_0 : i32
    scf.if %2 {
      %cst_9 = arith.constant 0.000000e+00 : f32
      %12 = vector.broadcast %cst_9 : f32 to vector<64x128xf32>
      %c0_10 = arith.constant 0 : index
      %c0_11 = arith.constant 0 : index
      %13 = vector.load %arg9[%c0_10, %c0_11] : memref<64x128xf32, #tpu.memory_space<vmem>>, vector<64x128xf32>
      tpu.vector_store %arg9[%c0_10, %c0_11], %12 {strides = array<i32>} : memref<64x128xf32, #tpu.memory_space<vmem>>, vector<64x128xf32>,
    } else {
    }
    %c0 = arith.constant 0 : index
    %c0_1 = arith.constant 0 : index
    %3 = vector.load %arg9[%c0, %c0_1] : memref<64x128xf32, #tpu.memory_space<vmem>>, vector<64x128xf32>
    %c0_2 = arith.constant 0 : index
    %c0_3 = arith.constant 0 : index
    %4 = vector.load %arg2[%c0_2, %c0_3] : memref<64x128xbf16, #tpu.memory_space<vmem>>, vector<64x128xbf16>
    %c0_4 = arith.constant 0 : index
    %c0_5 = arith.constant 0 : index
    %5 = vector.load %arg3[%c0_4, %c0_5] : memref<128x128xbf16, #tpu.memory_space<vmem>>, vector<128x128xbf16>
    %cst = arith.constant dense<0.000000e+00> : vector<64x128xf32>
    %6 = tpu.matmul %4, %5, %cst {dimension_numbers = #tpu.dot_dimension_numbers<[1], [0], [0], [1], [0, 0, 1, 1], [], []>} : vector<64x128xbf16>, vector<128x128xbf16>, vector<64x128xf32> -> vector<64x128xf32>
    %7 = arith.addf %3, %6 : vector<64x128xf32>
    %c0_6 = arith.constant 0 : index
    %c0_7 = arith.constant 0 : index
    %8 = vector.load %arg9[%c0_6, %c0_7] : memref<64x128xf32, #tpu.memory_space<vmem>>, vector<64x128xf32>
    tpu.vector_store %arg9[%c0_6, %c0_7], %7 {strides = array<i32>} : memref<64x128xf32, #tpu.memory_space<vmem>>, vector<64x128xf32>,
    %c1_i32 = arith.constant 1 : i32
    %9 = arith.cmpi eq, %arg1, %c1_i32 : i32
    %10 = arith.extui %9 : i1 to i32
    %c0_i32_8 = arith.constant 0 : i32
    %11 = arith.cmpi ne, %10, %c0_i32_8 : i32
    scf.if %11 {
      %c0_9 = arith.constant 0 : index
      %c0_10 = arith.constant 0 : index
      %12 = vector.load %arg4[%c0_9, %c0_10] : memref<64x128xbf16, #tpu.memory_space<vmem>>, vector<64x128xbf16>
      %c0_11 = arith.constant 0 : index
      %c0_12 = arith.constant 0 : index
      %13 = vector.load %arg9[%c0_11, %c0_12] : memref<64x128xf32, #tpu.memory_space<vmem>>, vector<64x128xf32>
      %14 = arith.truncf %13 : vector<64x128xf32> to vector<64x128xbf16>
      %c0_13 = arith.constant 0 : index
      %c0_14 = arith.constant 0 : index
      %15 = vector.load %arg5[%c0_13, %c0_14] : memref<128x128xbf16, #tpu.memory_space<vmem>>, vector<128x128xbf16>
      %cst_15 = arith.constant dense<0.000000e+00> : vector<64x128xf32>
      %16 = tpu.matmul %12, %15, %cst_15 {dimension_numbers = #tpu.dot_dimension_numbers<[1], [0], [0], [1], [0, 0, 1, 1], [], []>} : vector<64x128xbf16>, vector<128x128xbf16>, vector<64x128xf32> -> vector<64x128xf32>
      %c0_16 = arith.constant 0 : index
      %c0_17 = arith.constant 0 : index
      %17 = vector.load %arg6[%c0_16, %c0_17] : memref<128x128xbf16, #tpu.memory_space<vmem>>, vector<128x128xbf16>
      %cst_18 = arith.constant dense<0.000000e+00> : vector<64x128xf32>
      %18 = tpu.matmul %14, %17, %cst_18 {dimension_numbers = #tpu.dot_dimension_numbers<[1], [0], [0], [1], [0, 0, 1, 1], [], []>} : vector<64x128xbf16>, vector<128x128xbf16>, vector<64x128xf32> -> vector<64x128xf32>
      %19 = arith.addf %16, %18 : vector<64x128xf32>
      %c0_19 = arith.constant 0 : index
      %c0_20 = arith.constant 0 : index
      %20 = vector.load %arg7[%c0_19, %c0_20] : memref<1x128xf32, #tpu.memory_space<vmem>>, vector<1x128xf32>
      %21 = vector.broadcast %20 : vector<1x128xf32> to vector<64x128xf32>
      %22 = arith.addf %19, %21 : vector<64x128xf32>
      %cst_21 = arith.constant 0.000000e+00 : f32
      %23 = vector.broadcast %cst_21 : f32 to vector<64x128xf32>
      %24 = arith.maximumf %22, %23 : vector<64x128xf32>
      %c0_22 = arith.constant 0 : index
      %c0_23 = arith.constant 0 : index
      %25 = vector.load %arg8[%c0_22, %c0_23] : memref<64x128xf32, #tpu.memory_space<vmem>>, vector<64x128xf32>
      tpu.vector_store %arg8[%c0_22, %c0_23], %24 {strides = array<i32>} : memref<64x128xf32, #tpu.memory_space<vmem>>, vector<64x128xf32>,
    } else {
    }
    return
  }
  func.func @transform_0(%arg0: i32, %arg1: i32) -> (i32, i32) {
    %c0_i32 = arith.constant 0 : i32
    return %arg0, %arg1 : i32, i32
  }
  func.func @transform_1(%arg0: i32, %arg1: i32) -> (i32, i32) {
    %c0_i32 = arith.constant 0 : i32
    %c0_i32_0 = arith.constant 0 : i32
    return %arg1, %c0_i32 : i32, i32
  }
  func.func @transform_2(%arg0: i32, %arg1: i32) -> (i32, i32) {
    %c0_i32 = arith.constant 0 : i32
    %c0_i32_0 = arith.constant 0 : i32
    return %arg0, %c0_i32 : i32, i32
  }
  func.func @transform_3(%arg0: i32, %arg1: i32) -> (i32, i32) {
    %c0_i32 = arith.constant 0 : i32
    %c0_i32_0 = arith.constant 0 : i32
    %c0_i32_1 = arith.constant 0 : i32
    return %c0_i32, %c0_i32_0 : i32, i32
  }
  func.func @transform_4(%arg0: i32, %arg1: i32) -> (i32, i32) {
    %c0_i32 = arith.constant 0 : i32
    %c0_i32_0 = arith.constant 0 : i32
    %c0_i32_1 = arith.constant 0 : i32
    return %c0_i32, %c0_i32_0 : i32, i32
  }
  func.func @transform_5(%arg0: i32, %arg1: i32) -> (i32, i32) {
    %c0_i32 = arith.constant 0 : i32
    %c0_i32_0 = arith.constant 0 : i32
    %c0_i32_1 = arith.constant 0 : i32
    return %c0_i32, %c0_i32_0 : i32, i32
  }
  func.func @transform_6(%arg0: i32, %arg1: i32) -> (i32, i32) {
    %c0_i32 = arith.constant 0 : i32
    %c0_i32_0 = arith.constant 0 : i32
    return %arg0, %c0_i32 : i32, i32
  }
}

</mosaic_0001>

<bundles_post_ra>
// kernel: tpu_custom_call.1
= control target key start
LH: loop header
LB: loop body
LE: loop exit
PB: predicated region body
PF: predicated region fallthrough
CT: control target
= control target key end

     0   :  { %s2235_s0 = inlined_call_operand.hbm [shape: bf16[256,256], index: 0, kind: input, shape index: {}]   ;;  %s2236_s1 = inlined_call_operand.hbm [shape: bf16[256,128], index: 1, kind: input, shape index: {}]   ;;  %s2237_s2 = inlined_call_operand.hbm [shape: bf16[256,128], index: 2, kind: input, shape index: {}]   ;;  %s2238_s3 = inlined_call_operand.hbm [shape: bf16[128,128], index: 3, kind: input, shape index: {}]   ;;  %s2239_s4 = inlined_call_operand.hbm [shape: bf16[128,128], index: 4, kind: input, shape index: {}]   ;;  %s2240_s5 = inlined_call_operand.vmem [shape: f32[1,128], index: 5, kind: input, shape index: {}]   ;;  %s2241_s6 = inlined_call_operand.hbm [shape: f32[256,128], index: 6, kind: output, shape index: {}]  }
   0x1   :  { %2259 = sst [smem:[#allocation27_spill]] %s2235_s0 }
   0x2   :  { %2260 = sst [smem:[#allocation28_spill]] %s2236_s1 }
   0x3   :  { %2261 = sst [smem:[#allocation29_spill]] %s2237_s2 }
   0x4   :  { %2262 = sst [smem:[#allocation30_spill]] %s2238_s3 }
   0x5   :  { %2263 = sst [smem:[#allocation31_spill]] %s2239_s4 }
   0x6   :  { %2264 = sst [smem:[#allocation32_spill]] %s2240_s5 }
   0x7   :  { %2265 = sst [smem:[#allocation33_spill]] %s2241_s6 }
   0x8   :  { %11 = vsyncpa [#allocation4], 0 }
   0x9   :  { %13 = vsyncpa [#allocation4 + $0x1], 0 }
   0xa   :  { %14 = vsyncpa [#allocation7], 0 }
   0xb   :  { %16 = vsyncpa [#allocation7 + $0x1], 0 }
   0xc   :  { %17 = vsyncpa [#allocation10], 0 }
   0xd   :  { %18 = vsyncpa [#allocation5], 0 }
   0xe   :  { %20 = vsyncpa [#allocation5 + $0x1], 0  ;;  %s1820_s21 = smov 0   ;;  %s1822_s22 = smov 0  }
   0xf   :  { %s1824_s23 = smov 0   ;;  %s1826_s24 = smov 0  }
  0x10   :  { %s1828_s25 = smov 0   ;;  %s1830_s26 = smov 0  }
  0x11   :  { %s1832_s27 = smov 0   ;;  %s1834_s28 = smov 0  }
  0x12   :  { %s1836_s29 = smov 0   ;;  %s1838_s30 = smov 0  }
  0x13   :  { %s1840_s7 = smov 0   ;;  %s1842_s8 = smov 0  }
  0x14   :  { %s1844_s9 = smov 0   ;;  %s1846_s10 = smov 0  }
  0x15 LB: > { %2266 = sst [smem:[#allocation18_spill]] %s1735_s25  ;;  %s1891_s11 = sadd.s32 4294967295, %s1771_s10   ;;  %s1771_s10 = sphi %s1846_s10, %s26_s10   ;;  %s1767_s9 = sphi %s1844_s9, %s2321_s9   ;;  %s1763_s8 = sphi %s1842_s8, %s2331_s8   ;;  %s1759_s7 = sphi %s1840_s7, %s2319_s7   ;;  %s1755_s30 = sphi %s1838_s30, %s2330_s30   ;;  %s1751_s29 = sphi %s1836_s29, %s2329_s29   ;;  %s1747_s28 = sphi %s1834_s28, %s2328_s28   ;;  %s1743_s27 = sphi %s1832_s27, %s2327_s27   ;;  %s1739_s26 = sphi %s1830_s26, %s2326_s26   ;;  %s1735_s25 = sphi %s1828_s25, %s2325_s25   ;;  %s1731_s24 = sphi %s1826_s24, %s2317_s24   ;;  %s1727_s23 = sphi %s1824_s23, %s2324_s23   ;;  %s1723_s22 = sphi %s1822_s22, %s2323_s22   ;;  %s1719_s21 = sphi %s1820_s21, %s2322_s21  }
  0x16   : > { %2267 = sst [smem:[#allocation19_spill]] %s1755_s30  ;;  %p1095_p0 = scmp.ge.s32.totalorder %s1771_s10, 1 }
  0x17   : > { %2268 = sst [smem:[#allocation20_spill]] %s1759_s7  ;;  %p2254_p1 = scmp.eq.s32.totalorder %s1891_s11, 0 }
  0x18   : > { %2269 = sst [smem:[#allocation21_spill]] %s1767_s9  ;;  %p212_p3 = scmp.lt.s32.totalorder %s1771_s10, 9 }
  0x19   : > { %s1773_s13 = smov [#allocation9]  }
  0x1a   : > { %p1897_p4 = pnand %p1095_p0, %p212_p3  ;;  %s224_s14 = sshll.u32 %s1773_s13, 4  ;;  %s225_s14 = int_to_ptr.vmem [resolvable:$true] %s224_s14 }
  0x1b   : > { %s1490_s16 = scalar_lea.vmem %s225_s14, 1024  ;;  %p1498_p11 = scmp.lt.s32.totalorder %s225_s14, %s225_s14 }
  0x1c   : > { %s2270_s12 = scalar_select %p1897_p4, 1, 0 }
  0x1d   : > { %p1300_p5 = pneg %p1897_p4  ;;  %p1491_p8 = scmp.ne.s32.totalorder %s225_s14, %s1490_s16 }
  0x1e   : > { %2271 = sst [smem:[#allocation22_spill]] %s2270_s12  ;;  %p1499_p12 = scmp.lt.s32.totalorder %s1490_s16, %s1490_s16 }
  0x1f   : > { %p1905_p6 = pnand %p1300_p5, %p2254_p1 }
  0x20   : > { %p1500_p13 = por %p1499_p12, %p1498_p11 }
  0x21   : > { %p1481_p7 = pneg %p1905_p6 }
  0x23   : > { %p1493_p9 = pnand %p1491_p8, %p1481_p7 }
  0x25   : > { %p1494_p10 = pneg %p1493_p9 }
  0x27   : > { %p1501_p0 = pnand %p1500_p13, %p1494_p10 }
  0x29   : > { %1504 = shalt.err (!%p1501_p0)
}
  0x2a   : > { %s2243_s17 = smov 64   ;;  %s2245_s18 = smov 4  }
  0x2b   : > { %s2273_s3 = sld [smem:[#allocation30_spill]]  ;;  %s35_s13 = sadd.s32 1, %s1763_s8 }
  0x2c   : > { %s38_s16 = sadd.s32 1, %s1767_s9  ;;  %p36_p3 = scmp.ge.s32.totalorder %s35_s13, 2 }
  0x2d   : > { %p2255_p5 = scmp.eq.s32.totalorder %s1771_s10, 0  ;;  %s73_s6 = sadd.s32 1, %s1739_s26 }
  0x2e   : > { %p80_p8 = scmp.ne.s32.totalorder %s1739_s26, %s1735_s25  ;;  %s2333_s13 = smov (%p36_p3, %s35_s13), 0 }
  0x2f   : > { %2274 = sst [smem:[#allocation23_spill]] %s2333_s13  ;;  %s2335_s16 = smov (!%p36_p3, %s38_s16), %s1767_s9 }
  0x30   : > { %s43_s7 = ssub.s32 %s1763_s8, %s2333_s13  ;;  %p1935_p9 = por %p80_p8, %p2255_p5 }
  0x31   : > { %1303 = dma.hbm_to_vmem [thread:$0]  (!%p1905_p6), %s2273_s3, 1024, %s225_s14, [#allocation10], %s2243_s17, %s2243_s17, %s2245_s18  }
  0x32   : > { %p40_p10 = scmp.ge.s32.totalorder %s2335_s16, 4  ;;  %p71_p11 = scmp.eq.s32.totalorder %s43_s7, 0 }
  0x33   : > { %p86_p12 = scmp.ne.s32.totalorder %s1735_s25, %s1731_s24  ;;  %p2253_p13 = scmp.lt.s32.totalorder %s1771_s10, 8 }
  0x34   : > { %s2337_s16 = smov (%p40_p10, %s2335_s16), 0  ;;  %s277_s3 = sand.u32 1, %s1771_s10  }
  0x35   : > { %2276 = sst [smem:[#allocation24_spill]] %s2337_s16  ;;  %s1949_s20 = ssub.s32 %s1767_s9, %s2337_s16 }
  0x36   : > { %s1945_s19 = scalar_select %p71_p11, %s1739_s26, %s73_s6  }
  0x37   : > { %p1953_p0 = por %p86_p12, %p2254_p1  ;;  %s44_s18 = sor.u32 %s43_s7, %s1949_s20 }
  0x38   : > { %2277 = sst [smem:[#allocation25_spill]] %s1945_s19  ;;  %p1959_p8 = scmp.eq.s32.totalorder %s44_s18, 0 }
  0x39   : > { %s2278_s17 = scalar_select %p1953_p0, 1, 0 }
  0x3a   : > { %s279_s13 = sand.u32 1, %s1739_s26   ;;  %s1157_s6 = sshll.u32 %s1763_s8, 10 }
  0x3b   : > { %2279 = sst [smem:[#allocation26_spill]] %s2278_s17  ;;  %s1103_s5 = sshll.u32 %s279_s13, 6 }
  0x3c   : > { %s2281_s1 = sld [smem:[#allocation28_spill]]  ;;  %s281_s25 = scalar_lea.vmem [#allocation6], %s1103_s5 }
  0x3d   : > { %s288_s12 = sshll.u32 %s281_s25, 4  ;;  %p1973_p10 = pnand %p2253_p13, %p1935_p9  ;;  %s289_s12 = int_to_ptr.vmem [resolvable:$true] %s288_s12 }
  0x3e   : > { %s1776_s7 = smov [#allocation11]   ;;  %s1977_s2 = scalar_lea.sflag [#allocation7], %s277_s3 }
  0x3f   : > { %s237_s18 = sshll.u32 %s1776_s7, 4  ;;  %p1507_p11 = pneg %p1973_p10  ;;  %s238_s18 = int_to_ptr.vmem [resolvable:$true] %s237_s18 }
  0x40   : > { %s1518_s13 = scalar_lea.vmem %s289_s12, 1024  ;;  %s1777_s5 = smov [#allocation6]  }
  0x41   : > { %p1519_p12 = scmp.ne.s32.totalorder %s289_s12, %s1518_s13  ;;  %s1523_s25 = sshll.u32 %s1777_s5, 4  ;;  %s1524_s25 = int_to_ptr.vmem [resolvable:$false] %s1523_s25 }
  0x42   : > { %s287_s30 = scalar_lea.hbm %s2281_s1, %s1157_s6  ;;  %s1525_s16 = scalar_lea.vmem %s1524_s25, 2048 }
  0x43   : > { %p1521_p2 = pnand %p1519_p12, %p1507_p11  ;;  %p1526_p9 = scmp.lt.s32.totalorder %s289_s12, %s1524_s25 }
  0x44   : > { %p1527_p13 = scmp.lt.s32.totalorder %s1525_s16, %s1518_s13 }
  0x45   : > { %p1522_p3 = pneg %p1521_p2 }
  0x46   : > { %p1528_p1 = por %p1527_p13, %p1526_p9 }
  0x48   : > { %p1529_p5 = pnand %p1528_p1, %p1522_p3 }
  0x4a   : > { %1532 = shalt.err (!%p1529_p5)
}
  0x4b   : > { %s2283_s14 = smov 4   ;;  %s2284_s3 = smov 64  }
  0x4c   : > { %1313 = dma.hbm_to_vmem [thread:$0]  (!%p1973_p10), %s287_s30, 1024, %s289_s12, %s1977_s2, %s2284_s3, %s2284_s3, %s2283_s14  }
  0x4d   : > { %s1544_s19 = scalar_lea.vmem %s238_s18, 1024  ;;  %p1552_p0 = scmp.lt.s32.totalorder %s238_s18, %s238_s18 }
  0x4e   : > { %p1545_p2 = scmp.ne.s32.totalorder %s238_s18, %s1544_s19  ;;  %p1553_p4 = scmp.lt.s32.totalorder %s1544_s19, %s1544_s19 }
  0x50   : > { %p1547_p11 = pnand %p1545_p2, %p1481_p7  ;;  %p1554_p13 = por %p1553_p4, %p1552_p0 }
  0x52   : > { %p1548_p12 = pneg %p1547_p11 }
  0x54   : > { %p1555_p1 = pnand %p1554_p13, %p1548_p12 }
  0x56   : > { %1558 = shalt.err (!%p1555_p1)
}
  0x57   : > { %s2285_s4 = sld [smem:[#allocation31_spill]]  ;;  %s47_s30 = sadd.s32 1, %s1751_s29 }
  0x58   : > { %s2002_s12 = scalar_select %p1959_p8, %s1751_s29, %s47_s30  }
  0x59   : > { %p54_p4 = scmp.ne.s32.totalorder %s1751_s29, %s1747_s28  ;;  %p60_p7 = scmp.ne.s32.totalorder %s1747_s28, %s1743_s27 }
  0x5a   : > { %s254_s15 = sand.u32 1, %s1751_s29   ;;  %s1156_s7 = sshll.u32 %s1767_s9, 4 }
  0x5b   : > { %p2286_p5 = scmp.eq.s32.totalorder %s1771_s10, 0  ;;  %p2287_p3 = scmp.eq.s32.totalorder %s1891_s11, 0 }
  0x5c   : > { %s1099_s5 = sshll.u32 %s254_s15, 5  ;;  %s264_s25 = sadd.s32 %s1763_s8, %s1156_s7 }
  0x5d   : > { %1306 = dma.hbm_to_vmem [thread:$0]  (!%p1905_p6), %s2285_s4, 1024, %s238_s18, [#allocation10], %s2284_s3, %s2284_s3, %s2283_s14  }
  0x5e   : > { %p56_p0 = por %p2286_p5, %p54_p4  ;;  %p2014_p10 = por %p2287_p3, %p60_p7 }
  0x5f   : > { %s1102_s16 = sshll.u32 %s264_s25, 6  ;;  %s258_s18 = scalar_lea.vmem [#allocation3], %s1099_s5 }
  0x60   : > { %s267_s19 = sshll.u32 %s258_s18, 4  ;;  %s2289_s0 = sld [smem:[#allocation27_spill]]  ;;  %s268_s19 = int_to_ptr.vmem [resolvable:$true] %s267_s19 }
  0x61   : > { %p2290_p6 = scmp.lt.s32.totalorder %s1771_s10, 8  ;;  %s255_s30 = scalar_lea.sflag [#allocation4], %s254_s15 }
  0x62   : > { %s1572_s1 = scalar_lea.vmem %s268_s19, 512  ;;  %s1778_s7 = smov [#allocation3]  }
  0x63   : > { %p2024_p8 = pnand %p2290_p6, %p56_p0  ;;  %p1573_p2 = scmp.ne.s32.totalorder %s268_s19, %s1572_s1 }
  0x64   : > { %s1577_s5 = sshll.u32 %s1778_s7, 4  ;;  %s1578_s5 = int_to_ptr.vmem [resolvable:$false] %s1577_s5 }
  0x65   : > { %p1561_p9 = pneg %p2024_p8  ;;  %s1579_s25 = scalar_lea.vmem %s1578_s5, 1024 }
  0x66   : > { %s266_s6 = scalar_lea.hbm %s2289_s0, %s1102_s16  ;;  %p1580_p13 = scmp.lt.s32.totalorder %s268_s19, %s1578_s5 }
  0x67   : > { %p1575_p11 = pnand %p1573_p2, %p1561_p9  ;;  %p1581_p1 = scmp.lt.s32.totalorder %s1579_s25, %s1572_s1 }
  0x69   : > { %p1576_p12 = pneg %p1575_p11  ;;  %p1582_p4 = por %p1581_p1, %p1580_p13 }
  0x6b   : > { %p1583_p7 = pnand %p1582_p4, %p1576_p12 }
  0x6d   : > { %1586 = shalt.err (!%p1583_p7)
}
  0x6e   : > { %s1779_s16 = smov 128   ;;  %s1094_s1 = sadd.s32 4294967294, %s1771_s10  }
  0x6f   : > { %1310 = dma.hbm_to_vmem [thread:$0]  (!%p2024_p8), %s266_s6, 512, %s268_s19, %s255_s30, %s1779_s16, %s2284_s3, %s2283_s14  }
  0x70   : > { %s99_s15 = sadd.s32 1, %s1727_s23  ;;  %p106_p5 = scmp.ne.s32.totalorder %s1727_s23, %s1723_s22 }
  0x71   : > { %p2292_p0 = scmp.eq.s32.totalorder %s1949_s20, 0  ;;  %p2293_p3 = scmp.eq.s32.totalorder %s1771_s10, 0 }
  0x72   : > { %p112_p9 = scmp.ne.s32.totalorder %s1723_s22, %s1719_s21  ;;  %p2295_p2 = scmp.eq.s32.totalorder %s1891_s11, 7 }
  0x73   : > { %s2041_s18 = scalar_select %p2292_p0, %s1727_s23, %s99_s15  }
  0x74   : > { %p2045_p6 = por %p106_p5, %p2293_p3  ;;  %p2053_p11 = por %p2295_p2, %p106_p5 }
  0x75   : > { %p205_p8 = scmp.eq.s32.totalorder %s1094_s1, 7  ;;  %p2297_p12 = scmp.eq.s32.totalorder %s1891_s11, 0 }
  0x76   : > { %s300_s20 = sand.u32 1, %s1727_s23   ;;  %s1158_s30 = sshll.u32 %s1767_s9, 9 }
  0x77   : > { %p2059_p13 = por %p112_p9, %p2297_p12  ;;  %p2064_p1 = por %p205_p8, %p112_p9 }
  0x78   : > { %s1106_s27 = sshll.u32 %s300_s20, 5  ;;  %s2300_s25 = sld [smem:[#allocation29_spill]] }
  0x79   : > { %s2299_s6 = scalar_select %p2064_p1, 1, 0 }
  0x7a   : > { %s302_s15 = scalar_lea.vmem [#allocation8], %s1106_s27  ;;  %p2301_p4 = scmp.lt.s32.totalorder %s1771_s10, 8 }
  0x7b   : > { %s309_s0 = sshll.u32 %s302_s15, 4  ;;  %s1780_s20 = smov [#allocation8]   ;;  %s310_s0 = int_to_ptr.vmem [resolvable:$true] %s309_s0 }
  0x7c   : > { %p2076_p7 = pnand %p2301_p4, %p2045_p6  ;;  %s1600_s4 = scalar_lea.vmem %s310_s0, 512 }
  0x7d   : > { %p1601_p0 = scmp.ne.s32.totalorder %s310_s0, %s1600_s4  ;;  %s1605_s9 = sshll.u32 %s1780_s20, 4  ;;  %s1606_s9 = int_to_ptr.vmem [resolvable:$false] %s1605_s9 }
  0x7e   : > { %s308_s16 = scalar_lea.hbm %s2300_s25, %s1158_s30  ;;  %p1589_p5 = pneg %p2076_p7 }
  0x7f   : > { %s1607_s30 = scalar_lea.vmem %s1606_s9, 1024  ;;  %p1608_p2 = scmp.lt.s32.totalorder %s310_s0, %s1606_s9 }
  0x80   : > { %p1603_p3 = pnand %p1601_p0, %p1589_p5  ;;  %p1609_p8 = scmp.lt.s32.totalorder %s1607_s30, %s1600_s4 }
  0x82   : > { %p1604_p9 = pneg %p1603_p3  ;;  %p1610_p12 = por %p1609_p8, %p1608_p2 }
  0x84   : > { %p1611_p1 = pnand %p1610_p12, %p1604_p9 }
  0x86   : > { %1614 = shalt.err (!%p1611_p1)
}
  0x87   : > { %1316 = dma.hbm_to_vmem [thread:$0]  (!%p2076_p7), %s308_s16, 512, %s310_s0, %s1977_s2, %s2284_s3, %s2284_s3, %s2283_s14  }
  0x88   : > { %s2303_s17 = sld [smem:[#allocation22_spill]] }
  0x8e   : > { %p2304_p6 = scmp.ne.s32.totalorder %s2303_s17, 0 }
  0x8f   : > { %s323_s27 = sand.u32 (!%p2304_p6), 1, %s1747_s28  }
  0x90   : > { %321 = sbr.rel (%p2304_p6) target bundleno = 693 (0x2b5), region = 44  ;;  %s1110_s7 = sshll.u32 (!%p2304_p6), %s323_s27, 5 }
  0x91   : > { %s324_s5 = scalar_lea.sflag (!%p2304_p6), [#allocation4], %s323_s27  ;;  %s2091_s9 = scalar_lea.vmem (!%p2304_p6), [#allocation3], %s1110_s7 }
  0x95   : > { %1698 = dma.done.wait (%p2014_p10), %s324_s5, 512  }
  0x96   : > { %1700 = vsyncadd (%p2014_p10), %s324_s5, 4294966784  ;;  %s2305_s4 = sld [smem:[#allocation18_spill]]  ;;  %s332_s15 = sand.u32 1, %s1891_s11  }
  0x97   : > { %s2306_s25 = sld [smem:[#allocation26_spill]]  ;;  %s333_s14 = scalar_lea.sflag [#allocation7], %s332_s15 }
  0x9c   : > { %s334_s0 = sand.u32 1, %s2305_s4  }
  0x9d   : > { %s1111_s2 = sshll.u32 %s334_s0, 6  ;;  %p2307_p1 = scmp.ne.s32.totalorder %s2306_s25, 0 }
  0x9e   : > { %s2099_s3 = scalar_lea.vmem [#allocation6], %s1111_s2 }
  0x9f   : > { %1702 = dma.done.wait (%p2307_p1), %s333_s14, 1024  }
  0xa0   : > { %1704 = vsyncadd (%p2307_p1), %s333_s14, 4294966272  ;;  %s2106_s16 = sand.u32 1, %s1723_s22  }
  0xa1   : > { %s1112_s13 = sshll.u32 %s2106_s16, 5 }
  0xa2   : > { %s2109_s1 = scalar_lea.vmem [#allocation8], %s1112_s13 }
  0xa3   : > { %1706 = dma.done.wait (%p2059_p13), %s333_s14, 512  }
  0xa4   : > { %1708 = vsyncadd (%p2059_p13), %s333_s14, 4294966784  ;;  %p2308_p10 = scmp.eq.s32.totalorder %s1891_s11, 0 }
  0xa6   : > { %1710 = dma.done.wait (%p2308_p10), [#allocation10], 2048   ;;  %p2309_p4 = pmov %p2308_p10 }
  0xa7   : > { %s1115_s20 = sshll.u32 %s2106_s16, 6  ;;  %s2310_s17 = sld [smem:[#allocation19_spill]] }
  0xa8   : > { %1712 = vsyncadd (%p2309_p4), [#allocation10], 4294965248  ;;  %s2120_s30 = scalar_lea.vmem [#allocation12], %s1115_s20 }
  0xad   : > { %p1116_p7 = scmp.ne.s32.totalorder %s2310_s17, 0 }
  0xaf   : > { %400 = sbr.rel (%p1116_p7) target bundleno = 185 (0xb9), region = 68 }
  0xb4   : > { %v1781_v0 = vmov 0.0  }
  0xb5   : > { %401 = vst [vmem:[#allocation2 + $0x30] sm:$0xff] %v1781_v0  ;;  %402 = vst [vmem:[#allocation2] sm:$0xff] %v1781_v0 }
  0xb6   : > { %403 = vst [vmem:[#allocation2 + $0x18] sm:$0xff] %v1781_v0  ;;  %404 = vst [vmem:[#allocation2 + $0x10] sm:$0xff] %v1781_v0 }
  0xb7   : > { %405 = vst [vmem:[#allocation2 + $0x8] sm:$0xff] %v1781_v0  ;;  %406 = vst [vmem:[#allocation2 + $0x20] sm:$0xff] %v1781_v0 }
  0xb8   : > { %407 = vst [vmem:[#allocation2 + $0x28] sm:$0xff] %v1781_v0  ;;  %408 = vst [vmem:[#allocation2 + $0x38] sm:$0xff] %v1781_v0 }
  0xb9 PF: > { %v1447_v1 = vld [vmem:[%s2099_s3 + $0x38] sm:$0xff]   ;;  %v1448_v2 = vld [vmem:[%s2099_s3 + $0x30] sm:$0xff]   ;;  %v1449_v3 = vld [vmem:[%s2099_s3 + $0x28] sm:$0xff]   ;;  %s2311_s11 = sld [smem:[#allocation19_spill]] }
  0xba   : > { %1196 = vmatprep.subr.bf16.mxu0 %v1447_v1  ;;  %1268 = vmatprep.subr.bf16.mxu1 %v1447_v1  ;;  %v1450_v4 = vld [vmem:[%s2099_s3 + $0x20] sm:$0xff]   ;;  %v1456_v6 = vld [vmem:[%s2091_s9 + $0x10] sm:$0xff]   ;;  %v1451_v7 = vld [vmem:[%s2099_s3 + $0x18] sm:$0xff]  }
  0xbb   : > { %1197 = vmatpush3.bf16.msra.mxu0 %v1447_v1  ;;  %1276 = vmatpush3.bf16.msra.mxu1 %v1447_v1  ;;  %v1455_v5 = vld [vmem:[%s2091_s9] sm:$0xff]   ;;  %v1452_v8 = vld [vmem:[%s2099_s3 + $0x10] sm:$0xff]   ;;  %v1453_v9 = vld [vmem:[%s2099_s3 + $0x8] sm:$0xff]  }
  0xbc   : > { %1198 = vmatprep.subr.bf16.mxu0 %v1448_v2  ;;  %1269 = vmatprep.subr.bf16.mxu1 %v1448_v2  ;;  %v1454_v10 = vld [vmem:[%s2099_s3] sm:$0xff]   ;;  %v1457_v11 = vld [vmem:[%s2091_s9 + $0x8] sm:$0xff]   ;;  %v1458_v12 = vld [vmem:[%s2091_s9 + $0x18] sm:$0xff]  }
  0xbd   : > { %1212 = vmatprep.mubr.bf16.mxu0 %v1455_v5  ;;  %1216 = vmatprep.mubr.bf16.mxu1 %v1456_v6  ;;  %v411_v13 = vld [vmem:[#allocation2 + $0x18] sm:$0xff]  ;;  %v409_v17 = vld [vmem:[#allocation2 + $0x30] sm:$0xff]  ;;  %v410_v29 = vld [vmem:[#allocation2] sm:$0xff] }
  0xbe   : > { %v413_v18 = vld [vmem:[#allocation2 + $0x8] sm:$0xff]  ;;  %v412_v23 = vld [vmem:[#allocation2 + $0x10] sm:$0xff]  ;;  %v414_v30 = vld [vmem:[#allocation2 + $0x20] sm:$0xff] }
  0xbf   : > { %1199 = vmatpush3.bf16.msra.mxu0 %v1448_v2  ;;  %1277 = vmatpush3.bf16.msra.mxu1 %v1448_v2  ;;  %v415_v14 = vld [vmem:[#allocation2 + $0x28] sm:$0xff]  ;;  %v416_v24 = vld [vmem:[#allocation2 + $0x38] sm:$0xff]  ;;  %p1129_p13 = scmp.ne.s32.totalorder %s2311_s11, 1 }
  0xc0   : > { %1200 = vmatprep.subr.bf16.mxu0 %v1449_v3  ;;  %1270 = vmatprep.subr.bf16.mxu1 %v1449_v3  ;;  %s2312_s7 = sld [smem:[#allocation32_spill]] (!%p1129_p13) }
  0xc3   : > { %1201 = vmatpush3.bf16.msra.mxu0 %v1449_v3  ;;  %1278 = vmatpush3.bf16.msra.mxu1 %v1449_v3 }
  0xc4   : > { %1202 = vmatprep.subr.bf16.mxu0 %v1450_v4  ;;  %1271 = vmatprep.subr.bf16.mxu1 %v1450_v4 }
  0xc7   : > { %1203 = vmatpush3.bf16.msra.mxu0 %v1450_v4  ;;  %1279 = vmatpush3.bf16.msra.mxu1 %v1450_v4 }
  0xc8   : > { %1204 = vmatprep.subr.bf16.mxu0 %v1451_v7  ;;  %1272 = vmatprep.subr.bf16.mxu1 %v1451_v7 }
  0xcb   : > { %1205 = vmatpush3.bf16.msra.mxu0 %v1451_v7  ;;  %1280 = vmatpush3.bf16.msra.mxu1 %v1451_v7 }
  0xcc   : > { %1206 = vmatprep.subr.bf16.mxu0 %v1452_v8  ;;  %1273 = vmatprep.subr.bf16.mxu1 %v1452_v8 }
  0xcf   : > { %1207 = vmatpush3.bf16.msra.mxu0 %v1452_v8  ;;  %1281 = vmatpush3.bf16.msra.mxu1 %v1452_v8 }
  0xd0   : > { %1208 = vmatprep.subr.bf16.mxu0 %v1453_v9  ;;  %1274 = vmatprep.subr.bf16.mxu1 %v1453_v9 }
  0xd3   : > { %1209 = vmatpush3.bf16.msra.mxu0 %v1453_v9  ;;  %1282 = vmatpush3.bf16.msra.mxu1 %v1453_v9 }
  0xd4   : > { %1210 = vmatprep.subr.bf16.mxu0 %v1454_v10  ;;  %1275 = vmatprep.subr.bf16.mxu1 %v1454_v10 }
  0xd7   : > { %1211 = vmatpush3.bf16.msra.mxu0 %v1454_v10  ;;  %1283 = vmatpush3.bf16.msra.mxu1 %v1454_v10 }
  0xda   : > { %1213 = vmatmul.mubr.bf16.vlgmr.msra.gmra.mxu0 %v1457_v11  ;;  %1217 = vmatmul.mubr.bf16.vlgmr.msra.gmra.mxu1 %v1458_v12 }
 0x19a   : > { %v1214_v15 = vpop.f32.mrf.mxu0  ;;  %v1218_v16 = vpop.f32.mrf.mxu1 }
 0x19b   : > { %v580_v19 = vadd.f32 %v1214_v15, %v411_v13  ;;  %v584_v20 = vadd.f32 %v1218_v16, %v415_v14 }
 0x19c   : > { %v547_v21 = vpop.f32.mrf.mxu0  ;;  %v563_v22 = vpop.f32.mrf.mxu1 }
 0x19d   : > { %588 = vst [vmem:[#allocation2 + $0x18] sm:$0xff] %v580_v19  ;;  %592 = vst [vmem:[#allocation2 + $0x28] sm:$0xff] %v584_v20  ;;  %v578_v25 = vadd.f32 %v547_v21, %v409_v17  ;;  %v582_v26 = vadd.f32 %v563_v22, %v413_v18 }
 0x19e   : > { %v1215_v27 = vpop.f32.mrf.mxu0  ;;  %v1219_v28 = vpop.f32.mrf.mxu1 }
 0x19f   : > { %586 = vst [vmem:[#allocation2 + $0x30] sm:$0xff] %v578_v25  ;;  %590 = vst [vmem:[#allocation2 + $0x8] sm:$0xff] %v582_v26  ;;  %v581_v31 = vadd.f32 %v1215_v27, %v412_v23  ;;  %v585_v32 = vadd.f32 %v1219_v28, %v416_v24  ;;  %597 = sbr.rel (%p1129_p13) target bundleno = 668 (0x29c), region = 72 }
 0x1a0   : > { %v550_v33 = vpop.f32.mrf.mxu0  ;;  %v566_v34 = vpop.f32.mrf.mxu1 }
 0x1a1   : > { %589 = vst [vmem:[#allocation2 + $0x10] sm:$0xff] %v581_v31  ;;  %593 = vst [vmem:[#allocation2 + $0x38] sm:$0xff] %v585_v32  ;;  %v579_v35 = vadd.f32 %v550_v33, %v410_v29  ;;  %v583_v36 = vadd.f32 %v566_v34, %v414_v30 }
 0x1a3   : > { %587 = vst [vmem:[#allocation2] sm:$0xff] %v579_v35  ;;  %591 = vst [vmem:[#allocation2 + $0x20] sm:$0xff] %v583_v36 }
 0x1a4   : > { %v1459_v37 = vld [vmem:[#allocation11 + $0x38] sm:$0xff]   ;;  %v1461_v39 = vld [vmem:[#allocation11 + $0x30] sm:$0xff]   ;;  %v1463_v41 = vld [vmem:[#allocation11 + $0x28] sm:$0xff]  }
 0x1a5   : > { %v1460_v38 = vld [vmem:[#allocation9 + $0x38] sm:$0xff]   ;;  %1220 = vmatprep.subr.bf16.mxu0 %v1459_v37  ;;  %v1462_v40 = vld [vmem:[#allocation9 + $0x30] sm:$0xff]   ;;  %v1464_v42 = vld [vmem:[#allocation9 + $0x28] sm:$0xff]  }
 0x1a6   : > { %1244 = vmatprep.subr.bf16.mxu1 %v1460_v38  ;;  %1221 = vmatpush3.bf16.msra.mxu0 %v1459_v37  ;;  %v1465_v43 = vld [vmem:[#allocation11 + $0x20] sm:$0xff]   ;;  %v1467_v45 = vld [vmem:[#allocation11 + $0x18] sm:$0xff]   ;;  %v1469_v47 = vld [vmem:[#allocation11 + $0x10] sm:$0xff]  }
 0x1a7   : > { %1245 = vmatpush3.bf16.msra.mxu1 %v1460_v38  ;;  %1222 = vmatprep.subr.bf16.mxu0 %v1461_v39  ;;  %v1466_v44 = vld [vmem:[#allocation9 + $0x20] sm:$0xff]   ;;  %v1468_v46 = vld [vmem:[#allocation9 + $0x18] sm:$0xff]   ;;  %v606_v48 = vld [vmem:[#allocation2 + $0x30] sm:$0xff] }
 0x1a8   : > { %1246 = vmatprep.subr.bf16.mxu1 %v1462_v40  ;;  %v1470_v50 = vld [vmem:[#allocation9 + $0x10] sm:$0xff]   ;;  %v1475_v52 = vld [vmem:[%s2109_s1] sm:$0xff]   ;;  %v1471_v53 = vld [vmem:[#allocation11 + $0x8] sm:$0xff]  }
 0x1a9   : > { %v1472_v54 = vld [vmem:[#allocation9 + $0x8] sm:$0xff]   ;;  %1260 = vmatprep.mubr.bf16.mxu1 %v1475_v52  ;;  %v1473_v55 = vld [vmem:[#allocation11] sm:$0xff]   ;;  %v608_v57 = vld [vmem:[#allocation2 + $0x18] sm:$0xff] }
 0x1aa   : > { %1223 = vmatpush3.bf16.msra.mxu0 %v1461_v39  ;;  %v607_v49 = vld [vmem:[#allocation2] sm:$0xff]  ;;  %v609_v58 = vld [vmem:[#allocation2 + $0x10] sm:$0xff]  ;;  %v610_v59 = vld [vmem:[#allocation2 + $0x8] sm:$0xff] }
 0x1ab   : > { %1247 = vmatpush3.bf16.msra.mxu1 %v1462_v40  ;;  %1224 = vmatprep.subr.bf16.mxu0 %v1463_v41  ;;  %v614_v51 = vpack.c.bf16 %v607_v49, %v606_v48  ;;  %v1474_v56 = vld [vmem:[#allocation9] sm:$0xff]   ;;  %v615_v61 = vpack.c.bf16 %v609_v58, %v608_v57  ;;  %v1476_v62 = vld [vmem:[%s2109_s1 + $0x8] sm:$0xff]   ;;  %v1477_v0 = vld [vmem:[%s2109_s1 + $0x10] sm:$0xff]  }
 0x1ac   : > { %1248 = vmatprep.subr.bf16.mxu1 %v1464_v42  ;;  %v611_v60 = vld [vmem:[#allocation2 + $0x20] sm:$0xff]  ;;  %v612_v1 = vld [vmem:[#allocation2 + $0x28] sm:$0xff]  ;;  %v613_v2 = vld [vmem:[#allocation2 + $0x38] sm:$0xff] }
 0x1ad   : > { %1236 = vmatprep.mubr.bf16.mxu0 %v614_v51  ;;  %v616_v63 = vpack.c.bf16 %v611_v60, %v610_v59  ;;  %v617_v3 = vpack.c.bf16 %v613_v2, %v612_v1  ;;  %v1478_v4 = vld [vmem:[%s2109_s1 + $0x18] sm:$0xff]   ;;  %v1150_v7 = vld [vmem:[%s2312_s7] ss:$0 sm:$0xff] }
 0x1ae   : > { %1225 = vmatpush3.bf16.msra.mxu0 %v1463_v41 }
 0x1af   : > { %1249 = vmatpush3.bf16.msra.mxu1 %v1464_v42  ;;  %1226 = vmatprep.subr.bf16.mxu0 %v1465_v43 }
 0x1b0   : > { %1250 = vmatprep.subr.bf16.mxu1 %v1466_v44 }
 0x1b2   : > { %1227 = vmatpush3.bf16.msra.mxu0 %v1465_v43 }
 0x1b3   : > { %1251 = vmatpush3.bf16.msra.mxu1 %v1466_v44  ;;  %1228 = vmatprep.subr.bf16.mxu0 %v1467_v45 }
 0x1b4   : > { %1252 = vmatprep.subr.bf16.mxu1 %v1468_v46 }
 0x1b6   : > { %1229 = vmatpush3.bf16.msra.mxu0 %v1467_v45 }
 0x1b7   : > { %1253 = vmatpush3.bf16.msra.mxu1 %v1468_v46  ;;  %1230 = vmatprep.subr.bf16.mxu0 %v1469_v47 }
 0x1b8   : > { %1254 = vmatprep.subr.bf16.mxu1 %v1470_v50 }
 0x1ba   : > { %1231 = vmatpush3.bf16.msra.mxu0 %v1469_v47 }
 0x1bb   : > { %1255 = vmatpush3.bf16.msra.mxu1 %v1470_v50  ;;  %1232 = vmatprep.subr.bf16.mxu0 %v1471_v53 }
 0x1bc   : > { %1256 = vmatprep.subr.bf16.mxu1 %v1472_v54 }
 0x1be   : > { %1233 = vmatpush3.bf16.msra.mxu0 %v1471_v53 }
 0x1bf   : > { %1257 = vmatpush3.bf16.msra.mxu1 %v1472_v54  ;;  %1234 = vmatprep.subr.bf16.mxu0 %v1473_v55 }
 0x1c0   : > { %1258 = vmatprep.subr.bf16.mxu1 %v1474_v56 }
 0x1c2   : > { %1235 = vmatpush3.bf16.msra.mxu0 %v1473_v55 }
 0x1c3   : > { %1259 = vmatpush3.bf16.msra.mxu1 %v1474_v56 }
 0x1c5   : > { %1237 = vmatmul.mubr.bf16.vlgmr.msra.gmra.mxu0 %v615_v61 }
 0x1c6   : > { %1261 = vmatmul.mubr.bf16.vlgmr.msra.gmra.mxu1 %v1476_v62  ;;  %1240 = vmatprep.mubr.bf16.mxu0 %v616_v63 }
 0x1c7   : > { %1264 = vmatprep.mubr.bf16.mxu1 %v1477_v0 }
 0x1cd   : > { %1241 = vmatmul.mubr.bf16.gmra.mxu0 %v617_v3 }
 0x1ce   : > { %1265 = vmatmul.mubr.bf16.gmra.mxu1 %v1478_v4 }
 0x285   : > { %v1238_v5 = vpop.f32.mrf.mxu0 }
 0x286   : > { %v1262_v6 = vpop.f32.mrf.mxu1 }
 0x287   : > { %v878_v8 = vadd.f32 %v1262_v6, %v1238_v5  ;;  %v732_v9 = vpop.f32.mrf.mxu0 }
 0x288   : > { %v869_v10 = vpop.f32.mrf.mxu1 }
 0x289   : > { %v909_v11 = vadd.f32 %v1150_v7, %v878_v8  ;;  %v870_v12 = vadd.f32 %v869_v10, %v732_v9  ;;  %v1239_v13 = vpop.f32.mrf.mxu0 }
 0x28a   : > { %v1263_v14 = vpop.f32.mrf.mxu1 }
 0x28b   : > { %v917_v15 = vmax.f32 %v909_v11, 0.0  ;;  %v907_v16 = vadd.f32 %v1150_v7, %v870_v12  ;;  %v881_v17 = vadd.f32 %v1263_v14, %v1239_v13  ;;  %v735_v18 = vpop.f32.mrf.mxu0 }
 0x28c   : > { %v872_v19 = vpop.f32.mrf.mxu1 }
 0x28d   : > { %925 = vst [vmem:[%s2120_s30 + $0x10] sm:$0xff] %v917_v15  ;;  %v915_v20 = vmax.f32 %v907_v16, 0.0  ;;  %v910_v21 = vadd.f32 %v1150_v7, %v881_v17  ;;  %v873_v22 = vadd.f32 %v872_v19, %v735_v18  ;;  %v1242_v23 = vpop.f32.mrf.mxu0 }
 0x28e   : > { %v1266_v24 = vpop.f32.mrf.mxu1 }
 0x28f   : > { %923 = vst [vmem:[%s2120_s30] sm:$0xff] %v915_v20  ;;  %v918_v25 = vmax.f32 %v910_v21, 0.0  ;;  %v908_v26 = vadd.f32 %v1150_v7, %v873_v22  ;;  %v894_v27 = vadd.f32 %v1266_v24, %v1242_v23  ;;  %v748_v28 = vpop.f32.mrf.mxu0 }
 0x290   : > { %v885_v29 = vpop.f32.mrf.mxu1 }
 0x291   : > { %926 = vst [vmem:[%s2120_s30 + $0x18] sm:$0xff] %v918_v25  ;;  %v916_v30 = vmax.f32 %v908_v26, 0.0  ;;  %v913_v31 = vadd.f32 %v1150_v7, %v894_v27  ;;  %v886_v32 = vadd.f32 %v885_v29, %v748_v28  ;;  %v1243_v33 = vpop.f32.mrf.mxu0 }
 0x292   : > { %v1267_v34 = vpop.f32.mrf.mxu1 }
 0x293   : > { %924 = vst [vmem:[%s2120_s30 + $0x8] sm:$0xff] %v916_v30  ;;  %v921_v35 = vmax.f32 %v913_v31, 0.0  ;;  %v911_v36 = vadd.f32 %v1150_v7, %v886_v32  ;;  %v897_v37 = vadd.f32 %v1267_v34, %v1243_v33  ;;  %v751_v38 = vpop.f32.mrf.mxu0 }
 0x294   : > { %v888_v39 = vpop.f32.mrf.mxu1 }
 0x295   : > { %929 = vst [vmem:[%s2120_s30 + $0x30] sm:$0xff] %v921_v35  ;;  %v919_v40 = vmax.f32 %v911_v36, 0.0  ;;  %v914_v41 = vadd.f32 %v1150_v7, %v897_v37  ;;  %v889_v42 = vadd.f32 %v888_v39, %v751_v38 }
 0x297   : > { %927 = vst [vmem:[%s2120_s30 + $0x20] sm:$0xff] %v919_v40  ;;  %v922_v43 = vmax.f32 %v914_v41, 0.0  ;;  %v912_v44 = vadd.f32 %v1150_v7, %v889_v42 }
 0x299   : > { %930 = vst [vmem:[%s2120_s30 + $0x38] sm:$0xff] %v922_v43  ;;  %v920_v45 = vmax.f32 %v912_v44, 0.0 }
 0x29b   : > { %928 = vst [vmem:[%s2120_s30 + $0x28] sm:$0xff] %v920_v45 }
 0x29c PF: > { %s2313_s5 = sld [smem:[#allocation20_spill]]  ;;  %s945_s2 = sshll.u32 %s2120_s30, 4  ;;  %s2158_s2 = int_to_ptr.vmem [resolvable:$true] %s945_s2 }
 0x29d   : > { %s2314_s15 = sld [smem:[#allocation33_spill]]  ;;  %s932_s14 = scalar_lea.sflag [#allocation5], %s2106_s16 }
 0x29e   : > { %s1615_s3 = scalar_lea.vmem %s2158_s2, 1024  ;;  %s1782_s13 = smov [#allocation12]  }
 0x29f   : > { %p1616_p5 = scmp.ne.s32.totalorder %s2158_s2, %s1615_s3  ;;  %s1619_s1 = sshll.u32 %s1782_s13, 4  ;;  %s1620_s1 = int_to_ptr.vmem [resolvable:$false] %s1619_s1 }
 0x2a0   : > { %s1621_s20 = scalar_lea.vmem %s1620_s1, 2048  ;;  %p1622_p9 = scmp.lt.s32.totalorder %s2158_s2, %s1620_s1 }
 0x2a1   : > { %p1617_p0 = pnand %p1616_p5, %p2053_p11  ;;  %p1623_p2 = scmp.lt.s32.totalorder %s1621_s20, %s1615_s3 }
 0x2a2   : > { %s1159_s9 = sshll.u32 %s2313_s5, 10 }
 0x2a3   : > { %s2155_s0 = scalar_lea.hbm %s2314_s15, %s1159_s9  ;;  %p1618_p3 = pneg %p1617_p0 }
 0x2a4   : > { %p1624_p8 = por %p1623_p2, %p1622_p9 }
 0x2a6   : > { %p1625_p12 = pnand %p1624_p8, %p1618_p3 }
 0x2a8   : > { %1628 = shalt.err (!%p1625_p12)
}
 0x2a9   : > { %s1629_s30 = scalar_lea.hbm %s2155_s0, 1024  ;;  %s1633_s19 = scalar_lea.hbm %s2314_s15, 4096 }
 0x2aa   : > { %p1630_p6 = scmp.ne.s32.totalorder %s2155_s0, %s1629_s30  ;;  %p1634_p4 = scmp.lt.s32.totalorder %s2155_s0, %s2314_s15 }
 0x2ab   : > { %p1635_p7 = scmp.lt.s32.totalorder %s1633_s19, %s1629_s30 }
 0x2ac   : > { %p1631_p1 = pnand %p1630_p6, %p2053_p11 }
 0x2ad   : > { %p1636_p13 = por %p1635_p7, %p1634_p4 }
 0x2ae   : > { %p1632_p10 = pneg %p1631_p1 }
 0x2b0   : > { %p1637_p5 = pnand %p1636_p13, %p1632_p10 }
 0x2b2   : > { %1640 = shalt.err (!%p1637_p5)
}
 0x2b3   : > { %s1783_s5 = smov 128   ;;  %s1784_s9 = smov 8  }
 0x2b4   : > { %1298 = dma.vmem_to_hbm [thread:$0]  (%p2053_p11), %s2158_s2, 1024, %s2155_s0, %s932_s14, %s1783_s5, %s1783_s5, %s1784_s9  }
 0x2b5 PF: > { %p1326_p0 = scmp.ge.s32.totalorder %s1771_s10, 2  ;;  %s960_s4 = sand.u32 1, %s1719_s21  }
 0x2b6   : > { %p2315_p3 = scmp.ne.s32.totalorder %s2299_s6, 0  ;;  %s961_s25 = scalar_lea.sflag [#allocation5], %s960_s4 }
 0x2b8   : > { %p1318_p9 = pnand %p1326_p0, %p2315_p3 }
 0x2ba   : > { %p1319_p2 = pneg %p1318_p9 }
 0x2bc   : > { %1714 = dma.done.wait (%p1319_p2), %s961_s25, 1024  }
 0x2bd   : > { %1716 = vsyncadd (%p1319_p2), %s961_s25, 4294966272  ;;  %s26_s10 = sadd.s32 1, %s1771_s10   ;;  %s2317_s24 = sld [smem:[#allocation18_spill]] }
 0x2be   : > { %p2188_p8 = scmp.ge.s32.totalorder %s26_s10, 10   ;;  %s2318_s16 = sld [smem:[#allocation25_spill]] }
 0x2bf   : > { %s2319_s7 = sld [smem:[#allocation21_spill]]  ;;  %s2322_s21 = smov %s1723_s22 }
 0x2c0   : > { %s2320_s6 = sld [smem:[#allocation23_spill]]  ;;  %s2323_s22 = smov %s1727_s23 }
 0x2c1   : > { %s2321_s9 = sld [smem:[#allocation24_spill]]  ;;  %s2324_s23 = smov %s2041_s18 }
 0x2c2   : > { %s2325_s25 = smov %s1739_s26  ;;  %s2327_s27 = smov %s1747_s28 }
 0x2c3   : > { %s2328_s28 = smov %s1751_s29  ;;  %s2329_s29 = smov %s2002_s12 }
 0x2c4   : > { %s2326_s26 = smov %s2318_s16  ;;  %s2330_s30 = smov %s1763_s8 }
 0x2c5   :  { %25 = sbr.rel (!%p2188_p8) target bundleno = 21 (0x15), region = 129 }
 0x2c6   : > { %s2331_s8 = smov %s2320_s6 }
 0x2ca   :  { %966 = vsyncpa [#allocation4], 1 }
 0x2cb   :  { %968 = vsyncpa [#allocation4 + $0x1], 1 }
 0x2cc   :  { %969 = vsyncpa [#allocation7], 1 }
 0x2cd   :  { %971 = vsyncpa [#allocation7 + $0x1], 1 }
 0x2ce   :  { %972 = vsyncpa [#allocation10], 1 }
 0x2cf   :  { %973 = vsyncpa [#allocation5], 1 }
 0x2d0   :  { %975 = vsyncpa [#allocation5 + $0x1], 1 }

</bundles_post_ra>
